<compile_context>
chip_gen: v5e
topology: v5e:2x2
jax: 0.10.0
libtpu: 0.0.40
codegen_flags: <defaults>
</compile_context>

<pallas_src>
import functools

import jax
import jax.numpy as jnp
from jax.experimental import pallas as pl
from jax.experimental.pallas import tpu as pltpu


def _layernorm_kernel(x_ref, gamma_ref, beta_ref, o_ref, *, eps):
    # x_ref: (tile_rows, hidden); gamma_ref/beta_ref: (1, hidden)
    x = x_ref[...].astype(jnp.float32)
    n = jnp.float32(x.shape[-1])

    # One-pass reductions: sum(x) and sum(x*x) have no serial dependency on each other.
    s1 = jnp.sum(x, axis=-1, keepdims=True)          # (tile_rows, 1)
    s2 = jnp.sum(x * x, axis=-1, keepdims=True)      # (tile_rows, 1)
    mean = s1 / n
    # torch.std default = unbiased estimator (Bessel, N-1).  Clamp tiny negative
    # rounding results so sqrt never sees a negative.
    var = jnp.maximum((s2 - n * mean * mean) / (n - 1.0), 0.0)
    std = jnp.sqrt(var)

    # Per-row reciprocal on the (tile_rows, 1) column instead of a full-tile divide;
    # the full-tile work is then a single multiply.  approx=False keeps exactness
    # (approx EUP reciprocal would exceed the 1e-5 tolerance vs the reference).
    inv = pl.reciprocal(std + eps, approx=False)     # (tile_rows, 1)

    gamma = gamma_ref[...].astype(jnp.float32)       # (1, hidden)
    beta = beta_ref[...].astype(jnp.float32)         # (1, hidden)

    y = (x - mean) * inv * gamma + beta
    o_ref[...] = y.astype(o_ref.dtype)


def _choose_tile_rows(rows, hidden, dtype):
    """Largest row-tile that keeps the double-buffered working set well under VMEM."""
    itemsize = jnp.dtype(dtype).itemsize
    # Sublane packing: 8 rows for f32, 16 for bf16, 32 for int8/fp8.
    sublane = 8 * max(1, 4 // max(itemsize, 1))
    # Per-row VMEM bytes:
    #   2x double-buffered input tile + 2x output tile in native dtype (4 * itemsize)
    #   ~3 live f32 full-tile intermediates inside the body (x, diff, y)
    bytes_per_row = hidden * (4 * itemsize + 3 * 4)
    # Conservative budget so the same tiling also fits v7x's 64 MiB physical VMEM.
    budget = 24 * 1024 * 1024
    t = budget // max(bytes_per_row, 1)
    t = min(t, 2048)                                   # diminishing returns past ~1-2K rows
    t = min(t, pl.cdiv(rows, sublane) * sublane)       # never bigger than (rounded) rows
    t = (t // sublane) * sublane                       # keep sublane alignment
    return max(t, sublane)


def layer_norm(x, gamma, beta, *, eps=1e-6, tile_rows=None):
    """LayerNorm over the last axis, matching the PyTorch reference module semantics."""
    orig_shape = x.shape
    hidden = orig_shape[-1]
    x2d = x.reshape(-1, hidden)
    rows = x2d.shape[0]

    if tile_rows is None:
        tile_rows = _choose_tile_rows(rows, hidden, x.dtype)

    gamma2d = gamma.reshape(1, hidden)
    beta2d = beta.reshape(1, hidden)

    kernel = functools.partial(_layernorm_kernel, eps=eps)

    out = pl.pallas_call(
        kernel,
        out_shape=jax.ShapeDtypeStruct((rows, hidden), x.dtype),
        grid_spec=pltpu.PrefetchScalarGridSpec(
            num_scalar_prefetch=0,
            grid=(pl.cdiv(rows, tile_rows),),
            in_specs=[
                pl.BlockSpec((tile_rows, hidden), lambda i: (i, 0)),
                # gamma/beta: constant index_map -> resident, not re-DMA'd per step.
                pl.BlockSpec((1, hidden), lambda i: (0, 0)),
                pl.BlockSpec((1, hidden), lambda i: (0, 0)),
            ],
            out_specs=pl.BlockSpec((tile_rows, hidden), lambda i: (i, 0)),
        ),
        compiler_params=pltpu.CompilerParams(
            # "parallel" shards the row loop across both TensorCores on v7x;
            # neutral (harmless) on v5e/v6e.
            dimension_semantics=("parallel",),
            # Allow large double-buffered tiles: above the 16/32 MiB default scoped
            # limits, safely under v7x's 64 MiB physical VMEM.
            vmem_limit_bytes=48 * 1024 * 1024,
        ),
    )(x2d, gamma2d, beta2d)

    return out.reshape(orig_shape)


def _layer_norm_ref(x, gamma, beta, eps=1e-6):
    x32 = x.astype(jnp.float32)
    mean = jnp.mean(x32, axis=-1, keepdims=True)
    diff = x32 - mean
    n = x32.shape[-1]
    std = jnp.sqrt(jnp.sum(diff * diff, axis=-1, keepdims=True) / (n - 1))
    return (gamma * diff / (std + eps) + beta).astype(x.dtype)


if __name__ == "__main__":
    key = jax.random.PRNGKey(0)
    batch, seq, hidden = 2, 8, 32

    x = jax.random.normal(key, (batch, seq, hidden), dtype=jnp.float32)
    # Deterministic parameter init matching nn.Parameter(torch.ones/zeros(hidden))
    gamma = jnp.ones((hidden,), dtype=jnp.float32)
    beta = jnp.zeros((hidden,), dtype=jnp.float32)

    out = layer_norm(x, gamma, beta, eps=1e-6)
    out = jax.block_until_ready(out)

    ref = _layer_norm_ref(x, gamma, beta, eps=1e-6)
    assert out.shape == x.shape
    assert jnp.allclose(out, ref, atol=1e-5, rtol=1e-5)

    print("KERNEL_OK")
</pallas_src>

<mosaic_0001>
module attributes {stable_mosaic.version = 11 : i64} {
  func.func @_layernorm_kernel(%arg0: i32, %arg1: memref<16x32xf32, #tpu.memory_space<vmem>>, %arg2: memref<1x32xf32, #tpu.memory_space<vmem>>, %arg3: memref<1x32xf32, #tpu.memory_space<vmem>>, %arg4: memref<16x32xf32, #tpu.memory_space<vmem>>) attributes {dimension_semantics = [#tpu.dimension_semantics<parallel>], iteration_bounds = array<i64: 1>, scalar_prefetch = 0 : i64, scratch_operands = 0 : i64, tpu.core_type = #tpu.core_type<tc>, window_params = [{transform_indices = @transform_0, window_bounds = array<i64: 16, 32>}, {pipeline_mode = #tpu.pipeline_mode<synchronous>, transform_indices = @transform_1, window_bounds = array<i64: 1, 32>}, {pipeline_mode = #tpu.pipeline_mode<synchronous>, transform_indices = @transform_2, window_bounds = array<i64: 1, 32>}, {transform_indices = @transform_3, window_bounds = array<i64: 16, 32>}]} {
    %c0 = arith.constant 0 : index
    %c0_0 = arith.constant 0 : index
    %0 = vector.load %arg1[%c0, %c0_0] : memref<16x32xf32, #tpu.memory_space<vmem>>, vector<16x32xf32>
    %cst = arith.constant dense<0.000000e+00> : vector<16xf32>
    %1 = vector.multi_reduction <add>, %0, %cst [1] : vector<16x32xf32> to vector<16xf32>
    %2 = vector.shape_cast %1 : vector<16xf32> to vector<16x1xf32>
    %3 = arith.mulf %0, %0 : vector<16x32xf32>
    %cst_1 = arith.constant dense<0.000000e+00> : vector<16xf32>
    %4 = vector.multi_reduction <add>, %3, %cst_1 [1] : vector<16x32xf32> to vector<16xf32>
    %5 = vector.shape_cast %4 : vector<16xf32> to vector<16x1xf32>
    %cst_2 = arith.constant 3.200000e+01 : f32
    %6 = vector.broadcast %cst_2 : f32 to vector<16x1xf32>
    %7 = arith.divf %2, %6 : vector<16x1xf32>
    %cst_3 = arith.constant 3.200000e+01 : f32
    %8 = vector.broadcast %cst_3 : f32 to vector<16x1xf32>
    %9 = arith.mulf %8, %7 : vector<16x1xf32>
    %10 = arith.mulf %9, %7 : vector<16x1xf32>
    %11 = arith.subf %5, %10 : vector<16x1xf32>
    %cst_4 = arith.constant 3.200000e+01 : f32
    %cst_5 = arith.constant 1.000000e+00 : f32
    %12 = arith.subf %cst_4, %cst_5 : f32
    %13 = vector.broadcast %12 : f32 to vector<16x1xf32>
    %14 = arith.divf %11, %13 : vector<16x1xf32>
    %cst_6 = arith.constant 0.000000e+00 : f32
    %15 = vector.broadcast %cst_6 : f32 to vector<16x1xf32>
    %16 = arith.maximumf %14, %15 : vector<16x1xf32>
    %17 = math.sqrt %16 : vector<16x1xf32>
    %cst_7 = arith.constant 9.99999997E-7 : f32
    %18 = vector.broadcast %cst_7 : f32 to vector<16x1xf32>
    %19 = arith.addf %17, %18 : vector<16x1xf32>
    %20 = tpu.reciprocal %19 : vector<16x1xf32> -> vector<16x1xf32>
    %c0_8 = arith.constant 0 : index
    %c0_9 = arith.constant 0 : index
    %21 = vector.load %arg2[%c0_8, %c0_9] : memref<1x32xf32, #tpu.memory_space<vmem>>, vector<1x32xf32>
    %c0_10 = arith.constant 0 : index
    %c0_11 = arith.constant 0 : index
    %22 = vector.load %arg3[%c0_10, %c0_11] : memref<1x32xf32, #tpu.memory_space<vmem>>, vector<1x32xf32>
    %23 = vector.broadcast %7 : vector<16x1xf32> to vector<16x32xf32>
    %24 = arith.subf %0, %23 : vector<16x32xf32>
    %25 = vector.broadcast %20 : vector<16x1xf32> to vector<16x32xf32>
    %26 = arith.mulf %24, %25 : vector<16x32xf32>
    %27 = vector.broadcast %21 : vector<1x32xf32> to vector<16x32xf32>
    %28 = arith.mulf %26, %27 : vector<16x32xf32>
    %29 = vector.broadcast %22 : vector<1x32xf32> to vector<16x32xf32>
    %30 = arith.addf %28, %29 : vector<16x32xf32>
    %c0_12 = arith.constant 0 : index
    %c0_13 = arith.constant 0 : index
    %31 = vector.load %arg4[%c0_12, %c0_13] : memref<16x32xf32, #tpu.memory_space<vmem>>, vector<16x32xf32>
    tpu.vector_store %arg4[%c0_12, %c0_13], %30 {strides = array<i32>} : memref<16x32xf32, #tpu.memory_space<vmem>>, vector<16x32xf32>,
    return
  }
  func.func @transform_0(%arg0: i32) -> (i32, i32) {
    %c0_i32 = arith.constant 0 : i32
    %c0_i32_0 = arith.constant 0 : i32
    return %arg0, %c0_i32 : i32, i32
  }
  func.func @transform_1(%arg0: i32) -> (i32, i32) {
    %c0_i32 = arith.constant 0 : i32
    %c0_i32_0 = arith.constant 0 : i32
    %c0_i32_1 = arith.constant 0 : i32
    return %c0_i32, %c0_i32_0 : i32, i32
  }
  func.func @transform_2(%arg0: i32) -> (i32, i32) {
    %c0_i32 = arith.constant 0 : i32
    %c0_i32_0 = arith.constant 0 : i32
    %c0_i32_1 = arith.constant 0 : i32
    return %c0_i32, %c0_i32_0 : i32, i32
  }
  func.func @transform_3(%arg0: i32) -> (i32, i32) {
    %c0_i32 = arith.constant 0 : i32
    %c0_i32_0 = arith.constant 0 : i32
    return %arg0, %c0_i32 : i32, i32
  }
}

</mosaic_0001>

<bundles_post_ra>
// kernel: tpu_custom_call.1
= control target key start
LH: loop header
LB: loop body
LE: loop exit
PB: predicated region body
PF: predicated region fallthrough
CT: control target
= control target key end

     0   :  { %8 = vsyncpa [#allocation3], 0  ;;  %s352_s0 = inlined_call_operand.hbm [shape: f32[16,32], index: 0, kind: input, shape index: {}]   ;;  %s353_s1 = inlined_call_operand.hbm [shape: f32[1,32], index: 1, kind: input, shape index: {}]   ;;  %s354_s2 = inlined_call_operand.vmem [shape: f32[1,32], index: 2, kind: input, shape index: {}]   ;;  %s355_s3 = inlined_call_operand.hbm [shape: f32[16,32], index: 3, kind: output, shape index: {}]  }
   0x1   :  { %9 = vsyncpa [#allocation6], 0 }
   0x2   :  { %10 = vsyncpa [#allocation4], 0  ;;  %s15_s14 = sshll.u32 %s352_s0, 4  ;;  %s279_s15 = smov [#allocation2]   ;;  %s16_s14 = int_to_ptr.hbm [resolvable:$true] %s15_s14 }
   0x3   :  { %s17_s16 = sshll.u32 %s279_s15, 4  ;;  %s29_s19 = sshll.u32 %s353_s1, 4  ;;  %s18_s16 = int_to_ptr.vmem [resolvable:$true] %s17_s16  ;;  %s30_s19 = int_to_ptr.hbm [resolvable:$true] %s29_s19 }
   0x4   :  { %s280_s20 = smov 128   ;;  %s281_s21 = smov 8  }
   0x5   :  { %23 = dma.hbm_to_vmem [thread:$0]  %s16_s14, 256, %s18_s16, [#allocation3], %s280_s20, %s280_s20, %s281_s21  }
   0x6   :  { %s282_s22 = smov [#allocation5]  }
   0x7   :  { %s31_s23 = sshll.u32 %s282_s22, 4  ;;  %s32_s23 = int_to_ptr.vmem [resolvable:$true] %s31_s23 }
   0x8   :  { %34 = dma.hbm_to_vmem [thread:$0]  %s30_s19, 16, %s32_s23, [#allocation6]  }
   0x9   :  { %273 = dma.done.wait [#allocation3], 256  }
   0xa   :  { %274 = vsyncadd [#allocation3], 4294967040 }
   0xb   :  { %275 = dma.done.wait [#allocation6], 16  }
   0xc   :  { %276 = vsyncadd [#allocation6], 4294967280  ;;  %vm47_vm0 = vcmask 261120   ;;  %v315_v0 = vld [vmem:[#allocation2] sm:$0xff]  ;;  %v322_v4 = vld [vmem:[#allocation2 + $0x8] sm:$0xff]  ;;  %v283_v8 = vmov 32.0  }
   0xd   :  { %v48_v1 = vsel %vm47_vm0, %v315_v0, 0.0  ;;  %v54_v2 = vmul.f32 %v315_v0, %v315_v0  ;;  %v55_v5 = vmul.f32 %v322_v4, %v322_v4  ;;  %v51_v6 = vsel %vm47_vm0, %v322_v4, 0.0  ;;  %s166_s27 = sshll.u32 %s355_s3, 4  ;;  %s167_s27 = int_to_ptr.hbm [resolvable:$true] %s166_s27 }
   0xe   :  { %49 = vadd.xlane.f32.xlu0 %v48_v1  ;;  %189 = vrcp.f32 %v283_v8  ;;  %v284_v10 = vmov 31.0  }
   0xf   :  { %v56_v3 = vsel %vm47_vm0, %v54_v2, 0.0  ;;  %v59_v7 = vsel %vm47_vm0, %v55_v5, 0.0  ;;  %191 = vrcp.f32 %v284_v10 }
  0x10   :  { %57 = vadd.xlane.f32.xlu1 %v56_v3 }
  0x14   :  { %v190_v9 = vpop.eup %189 }
  0x15   :  { %v63_v11 = vmul.f32 32.0, %v190_v9  ;;  %v192_v13 = vpop.eup %191  ;;  %vm67_vm1 = vweird.f32 %v190_v9 }
  0x16   :  { %52 = vadd.xlane.f32.xlu0 %v51_v6  ;;  %v78_v15 = vmul.f32 31.0, %v192_v13  ;;  %vm82_vm2 = vweird.f32 %v192_v13 }
  0x17   :  { %v64_v12 = vsub.f32 1.0, %v63_v11 }
  0x18   :  { %60 = vadd.xlane.f32.xlu1 %v59_v7  ;;  %v79_v17 = vsub.f32 1.0, %v78_v15 }
  0x19   :  { %v65_v14 = vmul.f32 %v190_v9, %v64_v12 }
  0x1a   :  { %v80_v19 = vmul.f32 %v192_v13, %v79_v17 }
  0x1b   :  { %v66_v16 = vadd.f32 %v190_v9, %v65_v14 }
  0x1c   :  { %v81_v22 = vadd.f32 %v192_v13, %v80_v19 }
  0x1d   :  { %v68_v18 = vsel %vm67_vm1, %v190_v9, %v66_v16  ;;  %v187_v9 = vld [vmem:[#allocation5] ss:$0 sm:$0xff] }
  0x1e   :  { %v83_v26 = vsel %vm82_vm2, %v192_v13, %v81_v22  ;;  %v188_v13 = vld [vmem:[%s354_s2] ss:$0 sm:$0xff]  ;;  %s285_s2 = smov [#allocation7]  }
  0x1f   :  { %s164_s24 = sshll.u32 %s285_s2, 4  ;;  %s165_s24 = int_to_ptr.vmem [resolvable:$true] %s164_s24 }
  0x81   :  { %v50_v20 = vpop.xlane.xlu0 %49 }
  0x82   :  { %v329_v21 = vmul.f32 %v68_v18, %v50_v20 }
  0x83   :  { %v58_v23 = vpop.xlane.xlu1 %57 }
  0x84   :  { %v71_v24 = vmul.f32 32.0, %v329_v21  ;;  %v144_v7 = vsub.f32 %v315_v0, %v329_v21 }
  0x86   :  { %v73_v25 = vmul.f32 %v71_v24, %v329_v21 }
  0x88   :  { %v75_v27 = vsub.f32 %v58_v23, %v73_v25 }
  0x89   :  { %v53_v28 = vpop.xlane.xlu0 %52 }
  0x8a   :  { %v84_v29 = vmul.f32 %v83_v26, %v75_v27  ;;  %v333_v30 = vmul.f32 %v68_v18, %v53_v28 }
  0x8b   :  { %v61_v33 = vpop.xlane.xlu1 %60 }
  0x8c   :  { %v86_v31 = vmax.f32 %v84_v29, 0.0  ;;  %v72_v32 = vmul.f32 32.0, %v333_v30  ;;  %v145_v21 = vsub.f32 %v322_v4, %v333_v30 }
  0x8e   :  { %193 = vrsqrt.f32 %v86_v31  ;;  %v74_v34 = vmul.f32 %v72_v32, %v333_v30  ;;  %vm95_vm3 = vcmp.eq.f32.partialorder %v86_v31, inf  ;;  %v98_v47 = vand.u32 2147483648, %v86_v31 }
  0x8f   :  { %vm97_vm4 = vcmp.eq.f32.partialorder %v86_v31, 0.0 }
  0x90   :  { %v76_v35 = vsub.f32 %v61_v33, %v74_v34 }
  0x92   :  { %v85_v36 = vmul.f32 %v83_v26, %v76_v35 }
  0x94   :  { %v194_v37 = vpop.eup %193  ;;  %v87_v39 = vmax.f32 %v85_v36, 0.0 }
  0x95   :  { %v89_v38 = vmul.f32 %v194_v37, %v86_v31 }
  0x96   :  { %195 = vrsqrt.f32 %v87_v39  ;;  %vm107_vm5 = vcmp.eq.f32.partialorder %v87_v39, inf  ;;  %v110_v56 = vand.u32 2147483648, %v87_v39  ;;  %vm109_vm6 = vcmp.eq.f32.partialorder %v87_v39, 0.0 }
  0x97   :  { %v90_v40 = vmul.f32 %v194_v37, %v89_v38 }
  0x99   :  { %v91_v41 = vmul.f32 0.5, %v90_v40 }
  0x9b   :  { %v92_v42 = vsub.f32 1.5, %v91_v41 }
  0x9c   :  { %v196_v43 = vpop.eup %195 }
  0x9d   :  { %v93_v44 = vmul.f32 %v194_v37, %v92_v42  ;;  %v101_v45 = vmul.f32 %v196_v43, %v87_v39 }
  0x9f   :  { %v94_v46 = vmul.f32 %v93_v44, %v86_v31  ;;  %v102_v48 = vmul.f32 %v196_v43, %v101_v45 }
  0xa1   :  { %v96_v49 = vsel %vm95_vm3, %v86_v31, %v94_v46  ;;  %v103_v51 = vmul.f32 0.5, %v102_v48 }
  0xa2   :  { %v99_v50 = vsel %vm97_vm4, %v98_v47, %v96_v49 }
  0xa3   :  { %v112_v52 = vadd.f32 1e-06, %v99_v50  ;;  %v104_v53 = vsub.f32 1.5, %v103_v51 }
  0xa5   :  { %197 = vrcp.f32 %v112_v52  ;;  %v105_v54 = vmul.f32 %v196_v43, %v104_v53  ;;  %v125_v63 = vand.u32 2147483648, %v112_v52  ;;  %v123_v2 = vand.u32 2147483647, %v112_v52 }
  0xa6   :  { %vm119_vm8 = vweird.f32 %v112_v52 }
  0xa7   :  { %v106_v55 = vmul.f32 %v105_v54, %v87_v39  ;;  %v126_v5 = vor.u32 1.1754944e-38, %v125_v63  ;;  %vm124_vm10 = vcmp.eq.f32.partialorder %v123_v2, 8.507059e+37 }
  0xa9   :  { %v108_v57 = vsel %vm107_vm5, %v87_v39, %v106_v55 }
  0xaa   :  { %v111_v59 = vsel %vm109_vm6, %v110_v56, %v108_v57 }
  0xab   :  { %v198_v58 = vpop.eup %197  ;;  %v113_v60 = vadd.f32 1e-06, %v111_v59 }
  0xac   :  { %v115_v61 = vmul.f32 %v198_v58, %v112_v52  ;;  %vm120_vm7 = vweird.f32 %v198_v58 }
  0xad   :  { %199 = vrcp.f32 %v113_v60  ;;  %vm121_vm9 = vmor %vm119_vm8, %vm120_vm7  ;;  %v139_v15 = vand.u32 2147483648, %v113_v60  ;;  %v137_v18 = vand.u32 2147483647, %v113_v60  ;;  %vm133_vm12 = vweird.f32 %v113_v60 }
  0xae   :  { %v116_v62 = vsub.f32 1.0, %v115_v61 }
  0xaf   :  { %v140_v0 = vor.u32 1.1754944e-38, %v139_v15  ;;  %vm138_vm14 = vcmp.eq.f32.partialorder %v137_v18, 8.507059e+37 }
  0xb0   :  { %v117_v1 = vmul.f32 %v198_v58, %v116_v62 }
  0xb2   :  { %v118_v3 = vadd.f32 %v198_v58, %v117_v1 }
  0xb3   :  { %v200_v6 = vpop.eup %199 }
  0xb4   :  { %v122_v8 = vsel %vm121_vm9, %v198_v58, %v118_v3  ;;  %v129_v11 = vmul.f32 %v200_v6, %v113_v60  ;;  %vm134_vm11 = vweird.f32 %v200_v6 }
  0xb5   :  { %v127_v10 = vsel %vm124_vm10, %v126_v5, %v122_v8  ;;  %vm135_vm13 = vmor %vm133_vm12, %vm134_vm11 }
  0xb6   :  { %v146_v12 = vmul.f32 %v144_v7, %v127_v10  ;;  %v130_v14 = vsub.f32 1.0, %v129_v11 }
  0xb8   :  { %v151_v16 = vmul.f32 %v187_v9, %v146_v12  ;;  %v131_v17 = vmul.f32 %v200_v6, %v130_v14 }
  0xba   :  { %v156_v19 = vadd.f32 %v188_v13, %v151_v16  ;;  %v132_v20 = vadd.f32 %v200_v6, %v131_v17 }
  0xbc   :  { %158 = vst.msk [vmem:[#allocation7] sm:$0xff] %vm47_vm0, %v156_v19  ;;  %v136_v22 = vsel %vm135_vm13, %v200_v6, %v132_v20 }
  0xbd   :  { %v141_v23 = vsel %vm138_vm14, %v140_v0, %v136_v22 }
  0xbe   :  { %v147_v24 = vmul.f32 %v145_v21, %v141_v23 }
  0xc0   :  { %v152_v25 = vmul.f32 %v187_v9, %v147_v24 }
  0xc2   :  { %v157_v26 = vadd.f32 %v188_v13, %v152_v25 }
  0xc4   :  { %159 = vst.msk [vmem:[#allocation7 + $0x8] sm:$0xff] %vm47_vm0, %v157_v26 }
  0xc5   :  { %172 = dma.vmem_to_hbm [thread:$0]  %s165_s24, 256, %s167_s27, [#allocation4], %s280_s20, %s280_s20, %s281_s21  }
  0xc6   :  { %277 = dma.done.wait [#allocation4], 256  }
  0xc7   :  { %278 = vsyncadd [#allocation4], 4294967040 }
  0xc8   :  { %177 = vsyncpa [#allocation3], 1 }
  0xc9   :  { %178 = vsyncpa [#allocation6], 1 }
  0xca   :  { %179 = vsyncpa [#allocation4], 1 }

</bundles_post_ra>
